<compile_context>
chip_gen: v6e
topology: v6e:2x2x1
jax: 0.10.0
libtpu: 0.0.40
codegen_flags: <defaults>
</compile_context>

<pallas_src>
import functools

import jax
import jax.numpy as jnp
from jax import lax
from jax.experimental import pallas as pl
from jax.experimental.pallas import tpu as pltpu

_BN_EPS = 1e-5


# ---------------------------------------------------------------------------
# Tiling helper
# ---------------------------------------------------------------------------
def _pick_tile_m(M, cap=4096):
    """Lane tile for the pixel axis M.

    Only exact divisors of M are returned (ragged blocks would pollute the
    fused in-kernel BN statistics), multiples of 128 for unmasked stores,
    capped so double-buffered (K, tm) blocks stay far below v7x's 64 MiB VMEM.
    Prefers >= 4 grid steps (pipelining / balanced work), then >= 2, then the
    largest divisor; small ragged extents fall back to one full block.
    """
    if M % 128 != 0:
        return M                          # small ragged extent: one full block
    divs = [t for t in range(128, min(M, cap) + 1, 128) if M % t == 0]
    if not divs:
        return M
    for min_steps, floor in ((4, 512), (2, 256), (1, 128)):
        cands = [t for t in divs if M // t >= min_steps and t >= floor]
        if cands:
            return max(cands)
    return max(divs)


# ---------------------------------------------------------------------------
# Fused conv kernel:
#   (Co, K) @ (K, tm) bf16 matmul (f32 acc) with
#     - optional in-kernel BN+PReLU of the patch rows (pre-activation path)
#     - optional fused residual add
#     - fused batch mean / rstd of the output (accumulated over the M grid)
# ---------------------------------------------------------------------------
def _conv_kernel(*refs, has_bn, has_res, m_total, eps):
    it = iter(refs)
    w_ref = next(it)
    p_ref = next(it)
    if has_bn:
        scale_ref = next(it)
        shift_ref = next(it)
        alpha_ref = next(it)
    if has_res:
        res_ref = next(it)
    o_ref = next(it)
    mean_ref = next(it)
    rstd_ref = next(it)
    sum_sc = next(it)
    sq_sc = next(it)

    @pl.when(pl.program_id(0) == 0)
    def _():
        sum_sc[...] = jnp.zeros_like(sum_sc)
        sq_sc[...] = jnp.zeros_like(sq_sc)

    p = p_ref[...]
    if has_bn:
        # Pre-activation BN + PReLU applied to the im2col rows right before
        # the MXU (the activated feature map is never materialized in HBM).
        pf = p.astype(jnp.float32) * scale_ref[...] + shift_ref[...]
        a = alpha_ref[0, 0]
        pf = jnp.where(pf >= 0.0, pf, a * pf)
        p = pf.astype(jnp.bfloat16)

    y = jnp.dot(w_ref[...], p, preferred_element_type=jnp.float32)
    if has_res:
        y = y + res_ref[...]
    o_ref[...] = y

    # Fused batch statistics of the output (consumed by the next BN).
    sum_sc[...] += jnp.sum(y, axis=1, keepdims=True)
    sq_sc[...] += jnp.sum(y * y, axis=1, keepdims=True)

    @pl.when(pl.program_id(0) == pl.num_programs(0) - 1)
    def _():
        inv_m = 1.0 / m_total
        mean = sum_sc[...] * inv_m
        # single-pass variance, clamped against cancellation
        var = jnp.maximum(sq_sc[...] * inv_m - mean * mean, 0.0)
        mean_ref[...] = mean
        rstd_ref[...] = lax.rsqrt(var + eps)


def conv_matmul(lhs, patches, *, bn=None, shortcut=None):
    """(Co, K) @ (K, M) -> ((Co, M) f32, mean (Co,1), rstd (Co,1)).

    bn:       None or (scale (K,), shift (K,), alpha ()) applied in-kernel to
              the patch rows before the matmul (pre-activation BN+PReLU).
    shortcut: None or (slab, row_block): residual add of rows
              [row_block*Co : (row_block+1)*Co] of `slab`, fused in-kernel.
    """
    Co, K = lhs.shape
    _, M = patches.shape
    tm = _pick_tile_m(M)
    grid = (M // tm,)

    args = [lhs.astype(jnp.bfloat16), patches]
    in_specs = [pl.BlockSpec((Co, K), lambda i: (0, 0)),
                pl.BlockSpec((K, tm), lambda i: (0, i))]
    if bn is not None:
        scale, shift, alpha = bn
        args += [scale.reshape(K, 1).astype(jnp.float32),
                 shift.reshape(K, 1).astype(jnp.float32),
                 jnp.asarray(alpha, jnp.float32).reshape(1, 1)]
        in_specs += [pl.BlockSpec((K, 1), lambda i: (0, 0)),
                     pl.BlockSpec((K, 1), lambda i: (0, 0)),
                     pl.BlockSpec(memory_space=pltpu.MemorySpace.SMEM)]
    if shortcut is not None:
        s_slab, row_block = shortcut
        args.append(s_slab)
        in_specs.append(pl.BlockSpec((Co, tm),
                                     lambda i, rb=row_block: (rb, i)))

    kernel = functools.partial(_conv_kernel, has_bn=bn is not None,
                               has_res=shortcut is not None,
                               m_total=float(M), eps=_BN_EPS)
    out, mean, rstd = pl.pallas_call(
        kernel,
        out_shape=(jax.ShapeDtypeStruct((Co, M), jnp.float32),
                   jax.ShapeDtypeStruct((Co, 1), jnp.float32),
                   jax.ShapeDtypeStruct((Co, 1), jnp.float32)),
        grid=grid,
        in_specs=in_specs,
        out_specs=(pl.BlockSpec((Co, tm), lambda i: (0, i)),
                   pl.BlockSpec((Co, 1), lambda i: (0, 0)),
                   pl.BlockSpec((Co, 1), lambda i: (0, 0))),
        scratch_shapes=[pltpu.VMEM((Co, 1), jnp.float32),
                        pltpu.VMEM((Co, 1), jnp.float32)],
        compiler_params=pltpu.CompilerParams(
            dimension_semantics=("arbitrary",)),   # stats accumulate over M
    )(*args)
    return out, mean, rstd


# ---------------------------------------------------------------------------
# im2col (XLA wrapper) + conv wrappers on flat (C, N*H*W) slabs
# ---------------------------------------------------------------------------
def _im2col(x_slab, N, H, W, stride, pad_value=None):
    """3x3 / pad=1 im2col of a channel-first flat slab -> (9*Cin, M_out) bf16.

    `pad_value` (Cin,) lets the caller pick the border fill so that a BN+PReLU
    applied later *inside the conv kernel* still maps padding back to ~0.
    # TODO(synk): fold the 9 taps into the conv kernel (tap grid axis + strided
    # DMA of the padded activation) so this 9x slab is never written to HBM.
    """
    Cin = x_slab.shape[0]
    Ho = (H - 1) // stride + 1
    Wo = (W - 1) // stride + 1
    x4 = x_slab.reshape(Cin, N, H, W).astype(jnp.bfloat16)
    if pad_value is None:
        xp = jnp.pad(x4, ((0, 0), (0, 0), (1, 1), (1, 1)))
    else:
        pv = pad_value.astype(jnp.bfloat16).reshape(Cin, 1, 1, 1)
        xp = jnp.broadcast_to(pv, (Cin, N, H + 2, W + 2))
        xp = xp.at[:, :, 1:-1, 1:-1].set(x4)
    taps = [xp[:, :, ky::stride, kx::stride][:, :, :Ho, :Wo]
            for ky in range(3) for kx in range(3)]
    patches = jnp.concatenate(taps, axis=0).reshape(9 * Cin, N * Ho * Wo)
    return patches, Ho, Wo


def _w3x3_to_mat(w):
    # (Cout, Cin, 3, 3) torch layout -> (Cout, 9*Cin); column order
    # (ky, kx, cin) matches the tap-major im2col row order.
    Cout, Cin = w.shape[0], w.shape[1]
    return jnp.transpose(w, (0, 2, 3, 1)).reshape(Cout, 9 * Cin)


def conv3x3(x_slab, N, H, W, w, stride, *, bn=None, stack_1x1=None,
            shortcut=None):
    """3x3 conv (pad=1, no bias) on a flat slab as one fused Pallas call.

    bn:        (scale, shift, alpha) per *input* channel -> pre-activation
               BN+PReLU applied in-kernel on the patch rows.
    stack_1x1: optional (P_extra, Cin[,1,1]) 1x1/stride-s shortcut weight
               stacked into the LHS (centre-tap columns), sharing the same
               patch stream / MXU pass.
    shortcut:  optional (slab, row_block) residual fused in the epilogue.
    Returns (out (Co_total, M_out) f32, mean, rstd, Ho, Wo).
    """
    Cin = x_slab.shape[0]
    if bn is not None:
        scale, shift, alpha = bn
        # Border fill such that in-kernel BN+PReLU maps padding back to ~0
        # (PyTorch zero-pads the *activated* conv input).
        safe = jnp.where(scale != 0.0, scale, 1.0)
        pad_value = jnp.where(scale != 0.0, -shift / safe, 0.0)
        bn_k = (jnp.tile(scale, 9), jnp.tile(shift, 9), alpha)
    else:
        pad_value = None
        bn_k = None
    patches, Ho, Wo = _im2col(x_slab, N, H, W, stride, pad_value=pad_value)
    lhs = _w3x3_to_mat(w)
    if stack_1x1 is not None:
        P_extra = stack_1x1.shape[0]
        sc = jnp.zeros((P_extra, 9 * Cin), lhs.dtype)
        sc = sc.at[:, 4 * Cin:5 * Cin].set(stack_1x1.reshape(P_extra, Cin))
        lhs = jnp.concatenate([lhs, sc], axis=0)
    out, mean, rstd = conv_matmul(lhs, patches, bn=bn_k, shortcut=shortcut)
    return out, mean, rstd, Ho, Wo


# ---------------------------------------------------------------------------
# layer0's BN + PReLU (the only BN not directly followed by a conv):
# apply with precomputed stats, write bf16, and emit the output's statistics
# ---------------------------------------------------------------------------
def _bn_apply_stats_kernel(x_ref, scale_ref, shift_ref, alpha_ref,
                           o_ref, mean_ref, rstd_ref, sum_sc, sq_sc,
                           *, m_total, eps):
    @pl.when(pl.program_id(0) == 0)
    def _():
        sum_sc[...] = jnp.zeros_like(sum_sc)
        sq_sc[...] = jnp.zeros_like(sq_sc)

    y = x_ref[...] * scale_ref[...] + shift_ref[...]
    a = alpha_ref[0, 0]
    y = jnp.where(y >= 0.0, y, a * y)
    o_ref[...] = y.astype(o_ref.dtype)
    sum_sc[...] += jnp.sum(y, axis=1, keepdims=True)
    sq_sc[...] += jnp.sum(y * y, axis=1, keepdims=True)

    @pl.when(pl.program_id(0) == pl.num_programs(0) - 1)
    def _():
        inv_m = 1.0 / m_total
        mean = sum_sc[...] * inv_m
        var = jnp.maximum(sq_sc[...] * inv_m - mean * mean, 0.0)
        mean_ref[...] = mean
        rstd_ref[...] = lax.rsqrt(var + eps)


def bn_prelu_with_stats(x_slab, mean, rstd, gamma, beta, alpha):
    """BN (precomputed batch stats) + PReLU on a (C, M) f32 slab -> bf16 slab
    plus the batch statistics of the output (needed by the consumer's bn1)."""
    C, M = x_slab.shape
    scale = rstd.reshape(-1) * gamma
    shift = beta - mean.reshape(-1) * scale
    tm = _pick_tile_m(M)
    grid = (M // tm,)
    return pl.pallas_call(
        functools.partial(_bn_apply_stats_kernel, m_total=float(M),
                          eps=_BN_EPS),
        out_shape=(jax.ShapeDtypeStruct((C, M), jnp.bfloat16),
                   jax.ShapeDtypeStruct((C, 1), jnp.float32),
                   jax.ShapeDtypeStruct((C, 1), jnp.float32)),
        grid=grid,
        in_specs=[pl.BlockSpec((C, tm), lambda i: (0, i)),
                  pl.BlockSpec((C, 1), lambda i: (0, 0)),
                  pl.BlockSpec((C, 1), lambda i: (0, 0)),
                  pl.BlockSpec(memory_space=pltpu.MemorySpace.SMEM)],
        out_specs=(pl.BlockSpec((C, tm), lambda i: (0, i)),
                   pl.BlockSpec((C, 1), lambda i: (0, 0)),
                   pl.BlockSpec((C, 1), lambda i: (0, 0))),
        scratch_shapes=[pltpu.VMEM((C, 1), jnp.float32),
                        pltpu.VMEM((C, 1), jnp.float32)],
        compiler_params=pltpu.CompilerParams(
            dimension_semantics=("arbitrary",)),
    )(x_slab, scale.reshape(C, 1), shift.reshape(C, 1),
      jnp.asarray(alpha, jnp.float32).reshape(1, 1))


# ---------------------------------------------------------------------------
# avg_pool2d(3) + fc0 + PReLU fused into one tiny kernel
# ---------------------------------------------------------------------------
def _pool_fc_prelu_kernel(xw_ref, w_ref, b_ref, a_ref, o_ref):
    pooled = jnp.mean(xw_ref[...], axis=1)                  # (Np, K)
    y = jnp.dot(pooled, w_ref[...],
                preferred_element_type=jnp.float32) + b_ref[...]
    a = a_ref[0, 0]
    o_ref[...] = jnp.where(y >= 0.0, y, a * y)


def pool_fc_prelu(h_slab, N, H, W, w, b, alpha):
    """F.avg_pool2d(h, 3) -> NCHW flatten -> fc0 -> PReLU."""
    C = h_slab.shape[0]
    Ho, Wo = H // 3, W // 3
    K, D = w.shape
    assert K == C * Ho * Wo
    h = h_slab.reshape(C, N, H, W)
    xw = jnp.transpose(h[:, :, :Ho * 3, :Wo * 3].reshape(C, N, Ho, 3, Wo, 3),
                       (1, 3, 5, 0, 2, 4)).reshape(N, 9, K)
    Np = ((N + 7) // 8) * 8
    xw = jnp.pad(xw, ((0, Np - N), (0, 0), (0, 0)))
    out = pl.pallas_call(
        _pool_fc_prelu_kernel,
        out_shape=jax.ShapeDtypeStruct((Np, D), jnp.float32),
        grid=(1,),
        in_specs=[pl.BlockSpec((Np, 9, K), lambda i: (0, 0, 0)),
                  pl.BlockSpec((K, D), lambda i: (0, 0)),
                  pl.BlockSpec((1, D), lambda i: (0, 0)),
                  pl.BlockSpec(memory_space=pltpu.MemorySpace.SMEM)],
        out_specs=pl.BlockSpec((Np, D), lambda i: (0, 0)),
    )(xw, w, b.reshape(1, D), jnp.asarray(alpha, jnp.float32).reshape(1, 1))
    return out[:N]


# ---------------------------------------------------------------------------
# PreActBlock + DFEM forward (flat channel-first slabs internally)
# ---------------------------------------------------------------------------
def preact_block(x_slab, x_mean, x_rstd, N, H, W, p):
    """Pre-activation BasicBlock on a flat (Cin, N*H*W) slab.

    x_mean / x_rstd are the batch statistics of x produced by the conv that
    wrote x (fused-stats epilogue).  Returns (out, out_mean, out_rstd, Ho, Wo).
    Only 2 pallas_calls per block: conv1 (+stacked 1x1 shortcut, +bn1/PReLU1
    on the patch path, +stats) and conv2 (+bn2/PReLU2, +fused residual,
    +stats for the next block's bn1).
    """
    P = p["conv1_w"].shape[0]
    has_sc = "shortcut_w" in p

    scale1 = x_rstd.reshape(-1) * p["bn1_g"]
    shift1 = p["bn1_b"] - x_mean.reshape(-1) * scale1
    y1, m1, r1, Ho, Wo = conv3x3(
        x_slab, N, H, W, p["conv1_w"], p["stride"],
        bn=(scale1, shift1, p["prelu1"]),
        stack_1x1=p["shortcut_w"] if has_sc else None)
    # y1 rows [:P] = conv1 output; rows [P:] = 1x1 shortcut (when present).
    m1, r1 = m1[:P], r1[:P]

    scale2 = r1.reshape(-1) * p["bn2_g"]
    shift2 = p["bn2_b"] - m1.reshape(-1) * scale2
    shortcut = (y1, 1) if has_sc else (x_slab, 0)
    out, om, orstd, _, _ = conv3x3(
        y1[:P], N, Ho, Wo, p["conv2_w"], 1,
        bn=(scale2, shift2, p["prelu2"]),
        shortcut=shortcut)
    return out, om, orstd, Ho, Wo


def dfem_forward(x_nchw, params):
    N, Cimg, H, W = x_nchw.shape
    # channel-first flat (C, N*H*W) slab end-to-end: lane-dense, no XLA
    # (8,128) relayout padding between pallas_calls.
    x = jnp.transpose(x_nchw, (1, 0, 2, 3)).astype(jnp.float32)
    x = x.reshape(Cimg, N * H * W)

    l0 = params["layer0"]
    h0, m0, r0, Hc, Wc = conv3x3(x, N, H, W, l0["conv_w"], 1)
    h, hm, hr = bn_prelu_with_stats(h0, m0, r0, l0["bn_g"], l0["bn_b"],
                                    l0["prelu"])

    conv_layers = []
    shapes = []
    for li in range(4):
        for bp in params["layers"][li]:
            h, hm, hr, Hc, Wc = preact_block(h, hm, hr, N, Hc, Wc, bp)
        conv_layers.append(h)
        shapes.append((Hc, Wc))

    feat = pool_fc_prelu(conv_layers[-1], N, shapes[-1][0], shapes[-1][1],
                         params["fc_w"], params["fc_b"], params["fc_prelu"])
    maps = [jnp.transpose(
        conv_layers[i].reshape(-1, N, shapes[i][0], shapes[i][1]),
        (1, 0, 2, 3)) for i in range(4)]
    return feat, [maps[0], maps[1], maps[2], maps[3], maps[3]]


# ---------------------------------------------------------------------------
# Parameter init (PyTorch weight layouts)
# ---------------------------------------------------------------------------
def _init_conv(key, cout, cin, kh, kw):
    fan_in = float(cin * kh * kw)
    return (jax.random.normal(key, (cout, cin, kh, kw), jnp.float32)
            * jnp.sqrt(2.0 / fan_in))


def init_params(key, num_blocks, filt, dim, fc_in):
    keys = iter(jax.random.split(key, 128))
    params = {
        "layer0": dict(conv_w=_init_conv(next(keys), filt[0], 3, 3, 3),
                       bn_g=jnp.ones((filt[0],), jnp.float32),
                       bn_b=jnp.zeros((filt[0],), jnp.float32),
                       prelu=jnp.array(0.25, jnp.float32)),
    }
    in_planes = filt[0]
    layers = []
    for i in range(4):
        planes = filt[i + 1]
        strides = [2] + [1] * (num_blocks[i] - 1)
        blocks = []
        for s in strides:
            bp = dict(
                stride=s,
                bn1_g=jnp.ones((in_planes,), jnp.float32),
                bn1_b=jnp.zeros((in_planes,), jnp.float32),
                prelu1=jnp.array(0.25, jnp.float32),
                conv1_w=_init_conv(next(keys), planes, in_planes, 3, 3),
                bn2_g=jnp.ones((planes,), jnp.float32),
                bn2_b=jnp.zeros((planes,), jnp.float32),
                prelu2=jnp.array(0.25, jnp.float32),
                conv2_w=_init_conv(next(keys), planes, planes, 3, 3),
            )
            if s != 1 or in_planes != planes:
                bp["shortcut_w"] = _init_conv(next(keys), planes, in_planes, 1, 1)
            blocks.append(bp)
            in_planes = planes
        layers.append(blocks)
    params["layers"] = layers
    params["fc_w"] = (jax.random.normal(next(keys), (fc_in, dim), jnp.float32)
                      / jnp.sqrt(float(fc_in)))
    params["fc_b"] = jnp.zeros((dim,), jnp.float32)
    params["fc_prelu"] = jnp.array(0.25, jnp.float32)
    return params


# ---------------------------------------------------------------------------
if __name__ == "__main__":
    key = jax.random.PRNGKey(0)
    kx, kp = jax.random.split(key)

    # layer1 has a second (stride-1, identity-shortcut) block so both
    # PreActBlock code paths are exercised.
    num_blocks = [2, 1, 1, 1]
    filt = [8, 16, 32, 64, 128]
    dim = 32
    x = jax.random.normal(kx, (2, 3, 96, 96), jnp.float32)

    params = init_params(kp, num_blocks, filt, dim, fc_in=128 * 2 * 2)
    feat, feature_maps = dfem_forward(x, params)

    jax.block_until_ready(feat)
    for m in feature_maps:
        jax.block_until_ready(m)

    assert feat.shape == (2, dim)
    assert feature_maps[0].shape == (2, 16, 48, 48)
    assert feature_maps[1].shape == (2, 32, 24, 24)
    assert feature_maps[2].shape == (2, 64, 12, 12)
    assert feature_maps[3].shape == (2, 128, 6, 6)
    assert feature_maps[4].shape == (2, 128, 6, 6)
    assert bool(jnp.all(jnp.isfinite(feat)))
    for m in feature_maps:
        assert bool(jnp.all(jnp.isfinite(m)))

    print("KERNEL_OK")
</pallas_src>

<mosaic_0001>
module attributes {stable_mosaic.version = 11 : i64} {
  func.func @_conv_kernel(%arg0: i32, %arg1: memref<8x27xbf16, #tpu.memory_space<vmem>>, %arg2: memref<27x3072xbf16, #tpu.memory_space<vmem>>, %arg3: memref<8x3072xf32, #tpu.memory_space<vmem>>, %arg4: memref<8x1xf32, #tpu.memory_space<vmem>>, %arg5: memref<8x1xf32, #tpu.memory_space<vmem>>, %arg6: memref<8x1xf32, #tpu.memory_space<vmem>>, %arg7: memref<8x1xf32, #tpu.memory_space<vmem>>) attributes {dimension_semantics = [#tpu.dimension_semantics<arbitrary>], iteration_bounds = array<i64: 6>, scalar_prefetch = 0 : i64, scratch_operands = 2 : i64, tpu.core_type = #tpu.core_type<tc>, window_params = [{pipeline_mode = #tpu.pipeline_mode<synchronous>, transform_indices = @transform_0, window_bounds = array<i64: 8, 27>}, {transform_indices = @transform_1, window_bounds = array<i64: 27, 3072>}, {transform_indices = @transform_2, window_bounds = array<i64: 8, 3072>}, {pipeline_mode = #tpu.pipeline_mode<synchronous>, transform_indices = @transform_3, window_bounds = array<i64: 8, 1>}, {pipeline_mode = #tpu.pipeline_mode<synchronous>, transform_indices = @transform_4, window_bounds = array<i64: 8, 1>}]} {
    %c0_i32 = arith.constant 0 : i32
    %0 = arith.cmpi eq, %arg0, %c0_i32 : i32
    %1 = arith.extui %0 : i1 to i32
    %c0_i32_0 = arith.constant 0 : i32
    %2 = arith.cmpi ne, %1, %c0_i32_0 : i32
    scf.if %2 {
      %cst_17 = arith.constant 0.000000e+00 : f32
      %21 = vector.broadcast %cst_17 : f32 to vector<8x1xf32>
      %c0_18 = arith.constant 0 : index
      %c0_19 = arith.constant 0 : index
      %22 = vector.load %arg6[%c0_18, %c0_19] : memref<8x1xf32, #tpu.memory_space<vmem>>, vector<8x1xf32>
      tpu.vector_store %arg6[%c0_18, %c0_19], %21 {strides = array<i32>} : memref<8x1xf32, #tpu.memory_space<vmem>>, vector<8x1xf32>,
      %cst_20 = arith.constant 0.000000e+00 : f32
      %23 = vector.broadcast %cst_20 : f32 to vector<8x1xf32>
      %c0_21 = arith.constant 0 : index
      %c0_22 = arith.constant 0 : index
      %24 = vector.load %arg7[%c0_21, %c0_22] : memref<8x1xf32, #tpu.memory_space<vmem>>, vector<8x1xf32>
      tpu.vector_store %arg7[%c0_21, %c0_22], %23 {strides = array<i32>} : memref<8x1xf32, #tpu.memory_space<vmem>>, vector<8x1xf32>,
    } else {
    }
    %c0 = arith.constant 0 : index
    %c0_1 = arith.constant 0 : index
    %3 = vector.load %arg2[%c0, %c0_1] : memref<27x3072xbf16, #tpu.memory_space<vmem>>, vector<27x3072xbf16>
    %c0_2 = arith.constant 0 : index
    %c0_3 = arith.constant 0 : index
    %4 = vector.load %arg1[%c0_2, %c0_3] : memref<8x27xbf16, #tpu.memory_space<vmem>>, vector<8x27xbf16>
    %cst = arith.constant dense<0.000000e+00> : vector<8x3072xf32>
    %5 = tpu.matmul %4, %3, %cst {dimension_numbers = #tpu.dot_dimension_numbers<[1], [0], [0], [1], [0, 0, 1, 1], [], []>} : vector<8x27xbf16>, vector<27x3072xbf16>, vector<8x3072xf32> -> vector<8x3072xf32>
    %c0_4 = arith.constant 0 : index
    %c0_5 = arith.constant 0 : index
    %6 = vector.load %arg3[%c0_4, %c0_5] : memref<8x3072xf32, #tpu.memory_space<vmem>>, vector<8x3072xf32>
    tpu.vector_store %arg3[%c0_4, %c0_5], %5 {strides = array<i32>} : memref<8x3072xf32, #tpu.memory_space<vmem>>, vector<8x3072xf32>,
    %c0_6 = arith.constant 0 : index
    %c0_7 = arith.constant 0 : index
    %7 = vector.load %arg6[%c0_6, %c0_7] : memref<8x1xf32, #tpu.memory_space<vmem>>, vector<8x1xf32>
    %cst_8 = arith.constant dense<0.000000e+00> : vector<8xf32>
    %8 = vector.multi_reduction <add>, %5, %cst_8 [1] : vector<8x3072xf32> to vector<8xf32>
    %9 = vector.shape_cast %8 : vector<8xf32> to vector<8x1xf32>
    %10 = arith.addf %7, %9 : vector<8x1xf32>
    %c0_9 = arith.constant 0 : index
    %c0_10 = arith.constant 0 : index
    %11 = vector.load %arg6[%c0_9, %c0_10] : memref<8x1xf32, #tpu.memory_space<vmem>>, vector<8x1xf32>
    tpu.vector_store %arg6[%c0_9, %c0_10], %10 {strides = array<i32>} : memref<8x1xf32, #tpu.memory_space<vmem>>, vector<8x1xf32>,
    %c0_11 = arith.constant 0 : index
    %c0_12 = arith.constant 0 : index
    %12 = vector.load %arg7[%c0_11, %c0_12] : memref<8x1xf32, #tpu.memory_space<vmem>>, vector<8x1xf32>
    %13 = arith.mulf %5, %5 : vector<8x3072xf32>
    %cst_13 = arith.constant dense<0.000000e+00> : vector<8xf32>
    %14 = vector.multi_reduction <add>, %13, %cst_13 [1] : vector<8x3072xf32> to vector<8xf32>
    %15 = vector.shape_cast %14 : vector<8xf32> to vector<8x1xf32>
    %16 = arith.addf %12, %15 : vector<8x1xf32>
    %c0_14 = arith.constant 0 : index
    %c0_15 = arith.constant 0 : index
    %17 = vector.load %arg7[%c0_14, %c0_15] : memref<8x1xf32, #tpu.memory_space<vmem>>, vector<8x1xf32>
    tpu.vector_store %arg7[%c0_14, %c0_15], %16 {strides = array<i32>} : memref<8x1xf32, #tpu.memory_space<vmem>>, vector<8x1xf32>,
    %c5_i32 = arith.constant 5 : i32
    %18 = arith.cmpi eq, %arg0, %c5_i32 : i32
    %19 = arith.extui %18 : i1 to i32
    %c0_i32_16 = arith.constant 0 : i32
    %20 = arith.cmpi ne, %19, %c0_i32_16 : i32
    scf.if %20 {
      %c0_17 = arith.constant 0 : index
      %c0_18 = arith.constant 0 : index
      %21 = vector.load %arg6[%c0_17, %c0_18] : memref<8x1xf32, #tpu.memory_space<vmem>>, vector<8x1xf32>
      %cst_19 = arith.constant 5.42534726E-5 : f32
      %22 = vector.broadcast %cst_19 : f32 to vector<8x1xf32>
      %23 = arith.mulf %21, %22 : vector<8x1xf32>
      %c0_20 = arith.constant 0 : index
      %c0_21 = arith.constant 0 : index
      %24 = vector.load %arg7[%c0_20, %c0_21] : memref<8x1xf32, #tpu.memory_space<vmem>>, vector<8x1xf32>
      %cst_22 = arith.constant 5.42534726E-5 : f32
      %25 = vector.broadcast %cst_22 : f32 to vector<8x1xf32>
      %26 = arith.mulf %24, %25 : vector<8x1xf32>
      %27 = arith.mulf %23, %23 : vector<8x1xf32>
      %28 = arith.subf %26, %27 : vector<8x1xf32>
      %cst_23 = arith.constant 0.000000e+00 : f32
      %29 = vector.broadcast %cst_23 : f32 to vector<8x1xf32>
      %30 = arith.maximumf %28, %29 : vector<8x1xf32>
      %c0_24 = arith.constant 0 : index
      %c0_25 = arith.constant 0 : index
      %31 = vector.load %arg4[%c0_24, %c0_25] : memref<8x1xf32, #tpu.memory_space<vmem>>, vector<8x1xf32>
      tpu.vector_store %arg4[%c0_24, %c0_25], %23 {strides = array<i32>} : memref<8x1xf32, #tpu.memory_space<vmem>>, vector<8x1xf32>,
      %cst_26 = arith.constant 9.99999974E-6 : f32
      %32 = vector.broadcast %cst_26 : f32 to vector<8x1xf32>
      %33 = arith.addf %30, %32 : vector<8x1xf32>
      %34 = math.rsqrt %33 : vector<8x1xf32>
      %c0_27 = arith.constant 0 : index
      %c0_28 = arith.constant 0 : index
      %35 = vector.load %arg5[%c0_27, %c0_28] : memref<8x1xf32, #tpu.memory_space<vmem>>, vector<8x1xf32>
      tpu.vector_store %arg5[%c0_27, %c0_28], %34 {strides = array<i32>} : memref<8x1xf32, #tpu.memory_space<vmem>>, vector<8x1xf32>,
    } else {
    }
    return
  }
  func.func @transform_0(%arg0: i32) -> (i32, i32) {
    %c0_i32 = arith.constant 0 : i32
    %c0_i32_0 = arith.constant 0 : i32
    %c0_i32_1 = arith.constant 0 : i32
    return %c0_i32, %c0_i32_0 : i32, i32
  }
  func.func @transform_1(%arg0: i32) -> (i32, i32) {
    %c0_i32 = arith.constant 0 : i32
    %c0_i32_0 = arith.constant 0 : i32
    return %c0_i32, %arg0 : i32, i32
  }
  func.func @transform_2(%arg0: i32) -> (i32, i32) {
    %c0_i32 = arith.constant 0 : i32
    %c0_i32_0 = arith.constant 0 : i32
    return %c0_i32, %arg0 : i32, i32
  }
  func.func @transform_3(%arg0: i32) -> (i32, i32) {
    %c0_i32 = arith.constant 0 : i32
    %c0_i32_0 = arith.constant 0 : i32
    %c0_i32_1 = arith.constant 0 : i32
    return %c0_i32, %c0_i32_0 : i32, i32
  }
  func.func @transform_4(%arg0: i32) -> (i32, i32) {
    %c0_i32 = arith.constant 0 : i32
    %c0_i32_0 = arith.constant 0 : i32
    %c0_i32_1 = arith.constant 0 : i32
    return %c0_i32, %c0_i32_0 : i32, i32
  }
}

</mosaic_0001>

<bundles_post_ra>
// kernel: tpu_custom_call.1
= control target key start
LH: loop header
LB: loop body
LE: loop exit
PB: predicated region body
PF: predicated region fallthrough
CT: control target
= control target key end

     0   :  { %10 = vsyncpa [#allocation5], 0  ;;  %s1921_s0 = inlined_call_operand.hbm [shape: bf16[8,27], index: 0, kind: input, shape index: {}]   ;;  %s1922_s1 = inlined_call_operand.hbm [shape: bf16[27,18432], index: 1, kind: input, shape index: {}]   ;;  %s1923_s2 = inlined_call_operand.hbm [shape: f32[8,18432], index: 2, kind: output, shape index: {0}]   ;;  %s1924_s3 = inlined_call_operand.vmem [shape: f32[8,1], index: 3, kind: output, shape index: {1}]   ;;  %s1925_s4 = inlined_call_operand.vmem [shape: f32[8,1], index: 4, kind: output, shape index: {2}]  }
   0x1   :  { %11 = vsyncpa [#allocation8], 0 }
   0x2   :  { %13 = vsyncpa [#allocation8 + $0x1], 0 }
   0x3   :  { %14 = vsyncpa [#allocation6], 0 }
   0x4   :  { %16 = vsyncpa [#allocation6 + $0x1], 0  ;;  %s1600_s15 = smov 0   ;;  %s1602_s16 = smov 0  }
   0x5   :  { %s1604_s17 = smov 0   ;;  %s1606_s18 = smov 0  }
   0x6 LB: > { %s1621_s19 = sadd.s32 4294967295, %s1564_s18   ;;  %s1300_s20 = sadd.s32 4294967294, %s1564_s18   ;;  %s1564_s18 = sphi %s1606_s18, %s1948_s18   ;;  %s1560_s17 = sphi %s1604_s17, %s1947_s17   ;;  %s1556_s16 = sphi %s1602_s16, %s1946_s16   ;;  %s1552_s15 = sphi %s1600_s15, %s1945_s15  }
   0x7   : > { %s1625_s21 = sadd.s32 1, %s1564_s18   ;;  %s50_s22 = sadd.s32 1, %s1560_s17 }
   0x8   : > { %s47_s23 = ssub.s32 %s1564_s18, %s1625_s21  ;;  %p57_p0 = scmp.ne.s32.totalorder %s1560_s17, %s1556_s16 }
   0x9   : > { %p48_p1 = scmp.eq.s32.totalorder %s47_s23, 0  ;;  %p58_p2 = scmp.eq.s32.totalorder %s1564_s18, 0 }
   0xa   : > { %p63_p3 = scmp.ne.s32.totalorder %s1556_s16, %s1552_s15  ;;  %p1926_p4 = scmp.eq.s32.totalorder %s1621_s19, 0 }
   0xb   : > { %s1637_s24 = scalar_select %p48_p1, %s1560_s17, %s50_s22  }
   0xc   : > { %p1639_p5 = por %p58_p2, %p57_p0  ;;  %p1645_p6 = por %p1926_p4, %p63_p3 }
   0xd   : > { %p87_p7 = scmp.eq.s32.totalorder %s1621_s19, 5  ;;  %p93_p8 = scmp.eq.s32.totalorder %s1300_s20, 5 }
   0xe   : > { %s1931_s26 = scalar_select %p1645_p6, 1, 0 }
   0xf   : > { %p1301_p9 = scmp.ge.s32.totalorder %s1564_s18, 1  ;;  %p142_p10 = scmp.lt.s32.totalorder %s1564_s18, 7 }
  0x10   : > { %p1652_p11 = por %p87_p7, %p57_p0  ;;  %p1656_p12 = por %p93_p8, %p63_p3 }
  0x11   : > { %p1660_p13 = pnand %p1301_p9, %p142_p10  ;;  %s1566_s30 = smov [#allocation4]  }
  0x12   : > { %s1932_s27 = scalar_select %p1652_p11, 1, 0 }
  0x13   : > { %s1933_s28 = scalar_select %p1656_p12, 1, 0 }
  0x14   : > { %s1934_s29 = scalar_select %p1660_p13, 1, 0 }
  0x15   : > { %p1385_p2 = pneg %p1660_p13  ;;  %s155_s5 = sshll.u32 %s1566_s30, 4  ;;  %s156_s5 = int_to_ptr.vmem [resolvable:$true] %s155_s5 }
  0x16   : > { %p1398_p4 = scmp.lt.s32.totalorder %s1564_s18, 6  ;;  %p1935_p0 = scmp.eq.s32.totalorder %s1621_s19, 0 }
  0x17   : > { %s166_s7 = sand.u32 1, %s1560_s17   ;;  %s1453_s10 = scalar_lea.vmem %s156_s5, 64 }
  0x18   : > { %p1670_p7 = pnand %p1385_p2, %p1935_p0  ;;  %p1677_p3 = pnand %p1398_p4, %p1639_p5 }
  0x19   : > { %s1374_s9 = smul.u32 384, %s166_s7  ;;  %p1454_p9 = scmp.ne.s32.totalorder %s156_s5, %s1453_s10 }
  0x1a   : > { %p1444_p8 = pneg %p1670_p7  ;;  %p1461_p12 = scmp.lt.s32.totalorder %s156_s5, %s156_s5 }
  0x1b   : > { %p1462_p11 = scmp.lt.s32.totalorder %s1453_s10, %s1453_s10 }
  0x1c   : > { %p1456_p10 = pnand %p1454_p9, %p1444_p8 }
  0x1d   : > { %p1463_p2 = por %p1462_p11, %p1461_p12 }
  0x1e   : > { %p1457_p1 = pneg %p1456_p10 }
  0x20   : > { %p1464_p0 = pnand %p1463_p2, %p1457_p1 }
  0x22   : > { %1467 = shalt.err (!%p1464_p0)
}
  0x23   : > { %1388 = dma.hbm_to_vmem [thread:$0]  (!%p1670_p7), %s1921_s0, 64, %s156_s5, [#allocation5]  }
  0x24   : > { %s1372_s13 = smul.u32 1536, %s1564_s18  ;;  %s170_s14 = scalar_lea.vmem [#allocation7], %s1374_s9 }
  0x25   : > { %s177_s20 = sshll.u32 %s170_s14, 4  ;;  %s1696_s30 = scalar_lea.sflag [#allocation8], %s166_s7  ;;  %s1689_s20 = int_to_ptr.vmem [resolvable:$true] %s177_s20 }
  0x26   : > { %s1694_s25 = scalar_lea.hbm %s1922_s1, %s1372_s13  ;;  %p1470_p5 = pneg %p1677_p3 }
  0x27   : > { %s1468_s6 = scalar_lea.hbm %s1694_s25, 6144  ;;  %s1473_s10 = scalar_lea.hbm %s1922_s1, 36864 }
  0x28   : > { %p1469_p4 = scmp.ne.s32.totalorder %s1694_s25, %s1468_s6  ;;  %p1474_p1 = scmp.lt.s32.totalorder %s1694_s25, %s1922_s1 }
  0x29   : > { %p1475_p7 = scmp.lt.s32.totalorder %s1473_s10, %s1468_s6 }
  0x2a   : > { %p1471_p11 = pnand %p1470_p5, %p1469_p4 }
  0x2b   : > { %p1476_p8 = por %p1475_p7, %p1474_p1 }
  0x2c   : > { %p1472_p12 = pneg %p1471_p11 }
  0x2e   : > { %p1477_p9 = pnand %p1476_p8, %p1472_p12 }
  0x30   : > { %1480 = shalt.err (!%p1477_p9)
}
  0x31   : > { %s1481_s7 = scalar_lea.vmem %s1689_s20, 6144  ;;  %s1567_s13 = smov [#allocation7]  }
  0x32   : > { %p1482_p10 = scmp.ne.s32.totalorder %s1689_s20, %s1481_s7  ;;  %s1486_s14 = sshll.u32 %s1567_s13, 4  ;;  %s1487_s14 = int_to_ptr.vmem [resolvable:$false] %s1486_s14 }
  0x33   : > { %s1488_s22 = scalar_lea.vmem %s1487_s14, 12288  ;;  %p1489_p4 = scmp.lt.s32.totalorder %s1689_s20, %s1487_s14 }
  0x34   : > { %p1484_p2 = pnand %p1482_p10, %p1470_p5  ;;  %p1490_p11 = scmp.lt.s32.totalorder %s1488_s22, %s1481_s7 }
  0x36   : > { %p1485_p0 = pneg %p1484_p2  ;;  %p1491_p6 = por %p1490_p11, %p1489_p4 }
  0x38   : > { %p1492_p13 = pnand %p1491_p6, %p1485_p0 }
  0x3a   : > { %1495 = shalt.err (!%p1492_p13)
}
  0x3b   : > { %s1568_s23 = smov 9216   ;;  %s1569_s6 = smov 1536  }
  0x3c   : > { %s1570_s5 = smov 96   ;;  %p1938_p5 = scmp.ne.s32.totalorder %s1934_s29, 0 }
  0x3d   : > { %1392 = dma.hbm_to_vmem [thread:$0]  (!%p1677_p3), %s1694_s25, 6144, %s1689_s20, %s1696_s30, %s1568_s23, %s1569_s6, %s1570_s5  }
  0x3e   : > { %189 = sbr.rel (%p1938_p5) target bundleno = 536 (0x218), region = 28  ;;  %p1939_p12 = scmp.eq.s32.totalorder (!%p1938_p5), %s1621_s19, 0 }
  0x43   : > { %1539 = dma.done.wait (%p1939_p12), [#allocation5], 64   ;;  %p1940_p1 = pmov %p1939_p12 }
  0x44   : > { %s1724_s9 = sand.u32 1, %s1556_s16   ;;  %p1941_p6 = scmp.ne.s32.totalorder %s1931_s26, 0 }
  0x45   : > { %1541 = vsyncadd (%p1940_p1), [#allocation5], 4294967232  ;;  %s1375_s10 = smul.u32 384, %s1724_s9  ;;  %s196_s11 = scalar_lea.sflag [#allocation8], %s1724_s9 }
  0x47   : > { %s1728_s12 = scalar_lea.vmem [#allocation7], %s1375_s10 }
  0x48   : > { %1543 = dma.done.wait (%p1941_p6), %s196_s11, 6144  }
  0x49   : > { %1545 = vsyncadd (%p1941_p6), %s196_s11, 4294961152  ;;  %s1376_s29 = smul.u32 192, %s1724_s9  ;;  %p1942_p13 = scmp.ne.s32.totalorder %s1621_s19, 0 }
  0x4b   : > { %s1735_s8 = scalar_lea.vmem [#allocation9], %s1376_s29  ;;  %230 = sbr.rel (%p1942_p13) target bundleno = 82 (0x52), region = 40 }
  0x50   : > { %vm231_vm0 = vcmask 7168   ;;  %v1571_v0 = vmov 0.0  }
  0x51   : > { %232 = vst.msk [vmem:[#allocation2] sm:$0xff] %vm231_vm0, %v1571_v0  ;;  %233 = vst.msk [vmem:[#allocation3] sm:$0xff] %vm231_vm0, %v1571_v0 }
  0x52 PF: > { %v258_v1 = vld [vmem:[%s1728_s12 + $0xc0] sm:$0xff]  ;;  %vm503_vm1 = vcmask 1044480   ;;  %vm504_vm2 = vcmask 1045504   ;;  %v1572_v4 = vmov 65535   ;;  %v259_v6 = vld [vmem:[%s1728_s12 + $0xc8] sm:$0xff]  ;;  %v1573_v16 = vmov 0  }
  0x53   : > { %v270_v2 = vld [vmem:[%s1728_s12 + $0x120] sm:$0x33]  ;;  %v505_v5 = vsel %vm503_vm1, 4294967295, %v1572_v4  ;;  %v271_v7 = vld [vmem:[%s1728_s12 + $0x128] sm:$0x33]  ;;  %611 = vmatprep.mubr.bf16.mxu0 %v1573_v16  ;;  %652 = vmatprep.mubr.bf16.mxu1 %v1573_v16  ;;  %v260_v20 = vld [vmem:[%s1728_s12 + $0xd0] sm:$0xff] }
  0x54   : > { %v1333_v3 = vcombine.high %v258_v1, %v270_v2  ;;  %v1332_v8 = vcombine.low %v258_v1, %v270_v2  ;;  %v234_v9 = vld [vmem:[%s1728_s12] sm:$0xff]  ;;  %v1744_v10 = vsel %vm504_vm2, %v505_v5, 0  ;;  %v1335_v11 = vcombine.high %v259_v6, %v271_v7  ;;  %v235_v14 = vld [vmem:[%s1728_s12 + $0x8] sm:$0xff]  ;;  %v272_v21 = vld [vmem:[%s1728_s12 + $0x130] sm:$0x33]  ;;  %p1368_p3 = scmp.ne.s32.totalorder %s1621_s19, 5 }
  0x55   : > { %v1334_v12 = vcombine.low %v259_v6, %v271_v7  ;;  %v246_v13 = vld [vmem:[%s1728_s12 + $0x60] sm:$0xff]  ;;  %v247_v15 = vld [vmem:[%s1728_s12 + $0x68] sm:$0xff]  ;;  %v261_v25 = vld [vmem:[%s1728_s12 + $0xd8] sm:$0xff]  ;;  %v1337_v27 = vcombine.high %v260_v20, %v272_v21  ;;  %v1336_v30 = vcombine.low %v260_v20, %v272_v21  ;;  %vm499_vm3 = vcmask 220160  }
  0x56   : > { %v511_v17 = vand.u32 %v1333_v3, %v1744_v10  ;;  %v508_v18 = vand.u32 %v1332_v8, %v1744_v10  ;;  %v1309_v19 = vcombine.high %v234_v9, %v246_v13  ;;  %v517_v22 = vand.u32 %v1335_v11, %v1744_v10  ;;  %v273_v26 = vld [vmem:[%s1728_s12 + $0x138] sm:$0x33]  ;;  %v236_v34 = vld [vmem:[%s1728_s12 + $0x10] sm:$0xff]  ;;  %v262_v38 = vld [vmem:[%s1728_s12 + $0xe0] sm:$0xff] }
  0x57   : > { %v514_v23 = vand.u32 %v1334_v12, %v1744_v10  ;;  %v1311_v24 = vcombine.high %v235_v14, %v247_v15  ;;  %v1339_v28 = vcombine.high %v261_v25, %v273_v26  ;;  %v1308_v29 = vcombine.low %v234_v9, %v246_v13  ;;  %v248_v35 = vld [vmem:[%s1728_s12 + $0x70] sm:$0xff]  ;;  %v237_v37 = vld [vmem:[%s1728_s12 + $0x18] sm:$0xff]  ;;  %v274_v39 = vld [vmem:[%s1728_s12 + $0x140] sm:$0x33] }
  0x58   : > { %591 = vmatprep.subr.bf16.mxu0 %v511_v17  ;;  %632 = vmatprep.subr.bf16.mxu1 %v517_v22  ;;  %v1310_v31 = vcombine.low %v235_v14, %v247_v15  ;;  %v523_v32 = vand.u32 %v1337_v27, %v1744_v10  ;;  %v1338_v33 = vcombine.low %v261_v25, %v273_v26  ;;  %v249_v40 = vld [vmem:[%s1728_s12 + $0x78] sm:$0xff]  ;;  %v263_v41 = vld [vmem:[%s1728_s12 + $0xe8] sm:$0xff]  ;;  %v238_v55 = vld [vmem:[%s1728_s12 + $0x20] sm:$0xff]  ;;  %vm1122_vm4 = vcmask 7168  }
  0x59   : > { %592 = vmatpush1.bf16.msra.mxu0 %v508_v18  ;;  %633 = vmatpush1.bf16.msra.mxu1 %v514_v23  ;;  %v529_v36 = vand.u32 %v1339_v28, %v1744_v10  ;;  %v275_v42 = vld [vmem:[%s1728_s12 + $0x148] sm:$0x33]  ;;  %v1769_v43 = vld [vmem:[#allocation4] sm:$0xf]  ;;  %v520_v44 = vand.u32 %v1336_v30, %v1744_v10  ;;  %v1313_v46 = vcombine.high %v236_v34, %v248_v35  ;;  %v250_v56 = vld [vmem:[%s1728_s12 + $0x80] sm:$0xff] }
  0x5a   : > { %593 = vmatprep.subr.bf16.mxu0 %v1309_v19  ;;  %634 = vmatprep.subr.bf16.mxu1 %v1311_v24  ;;  %v526_v45 = vand.u32 %v1338_v33, %v1744_v10  ;;  %v1341_v47 = vcombine.high %v262_v38, %v274_v39  ;;  %v1315_v48 = vcombine.high %v237_v37, %v249_v40  ;;  %v239_v58 = vld [vmem:[%s1728_s12 + $0x28] sm:$0xff]  ;;  %v264_v59 = vld [vmem:[%s1728_s12 + $0xf0] sm:$0xff]  ;;  %v265_v62 = vld [vmem:[%s1728_s12 + $0xf8] sm:$0xff] }
  0x5b   : > { %v1343_v49 = vcombine.high %v263_v41, %v275_v42  ;;  %v1312_v50 = vcombine.low %v236_v34, %v248_v35  ;;  %v1340_v51 = vcombine.low %v262_v38, %v274_v39  ;;  %v1314_v52 = vcombine.low %v237_v37, %v249_v40  ;;  %v276_v60 = vld [vmem:[%s1728_s12 + $0x150] sm:$0x33]  ;;  %v251_v61 = vld [vmem:[%s1728_s12 + $0x88] sm:$0xff]  ;;  %v277_v63 = vld [vmem:[%s1728_s12 + $0x158] sm:$0x33] }
  0x5c   : > { %v535_v53 = vand.u32 %v1341_v47, %v1744_v10  ;;  %v1342_v54 = vcombine.low %v263_v41, %v275_v42  ;;  %v1317_v2 = vcombine.high %v238_v55, %v250_v56  ;;  %v1345_v3 = vcombine.high %v264_v59, %v276_v60  ;;  %v240_v12 = vld [vmem:[%s1728_s12 + $0x30] sm:$0xff]  ;;  %v241_v15 = vld [vmem:[%s1728_s12 + $0x38] sm:$0xff]  ;;  %v266_v17 = vld [vmem:[%s1728_s12 + $0x100] sm:$0xff] }
  0x5d   : > { %594 = vmatpush1.bf16.msra.mxu0 %v1308_v29  ;;  %635 = vmatpush1.bf16.msra.mxu1 %v1310_v31  ;;  %v541_v57 = vand.u32 %v1343_v49, %v1744_v10  ;;  %v532_v0 = vand.u32 %v1340_v51, %v1744_v10  ;;  %v1319_v4 = vcombine.high %v239_v58, %v251_v61  ;;  %v252_v13 = vld [vmem:[%s1728_s12 + $0x90] sm:$0xff]  ;;  %v278_v18 = vld [vmem:[%s1728_s12 + $0x160] sm:$0x33]  ;;  %v253_v19 = vld [vmem:[%s1728_s12 + $0x98] sm:$0xff] }
  0x5e   : > { %673 = vmatprep.subr.bf16.mxu0 %v523_v32  ;;  %714 = vmatprep.subr.bf16.mxu1 %v529_v36  ;;  %v538_v1 = vand.u32 %v1342_v54, %v1744_v10  ;;  %v1347_v5 = vcombine.high %v265_v62, %v277_v63  ;;  %v1316_v6 = vcombine.low %v238_v55, %v250_v56  ;;  %v267_v20 = vld [vmem:[%s1728_s12 + $0x108] sm:$0xff]  ;;  %v242_v33 = vld [vmem:[%s1728_s12 + $0x40] sm:$0xff]  ;;  %v268_v37 = vld [vmem:[%s1728_s12 + $0x110] sm:$0xff] }
  0x5f   : > { %v1344_v7 = vcombine.low %v264_v59, %v276_v60  ;;  %v1318_v8 = vcombine.low %v239_v58, %v251_v61  ;;  %v547_v9 = vand.u32 %v1345_v3, %v1744_v10  ;;  %v1346_v11 = vcombine.low %v265_v62, %v277_v63  ;;  %v279_v21 = vld [vmem:[%s1728_s12 + $0x168] sm:$0x33]  ;;  %v254_v34 = vld [vmem:[%s1728_s12 + $0xa0] sm:$0xff]  ;;  %v280_v38 = vld [vmem:[%s1728_s12 + $0x170] sm:$0x33] }
  0x60   : > { %1356 = vmatmul.mubr.msk.bf16.vlgmr.msra.gmra.mxu0 %vm499_vm3, %v1769_v43  ;;  %1357 = vmatmul.mubr.msk.bf16.vlgmr.msra.gmra.mxu1 %vm499_vm3, %v1769_v43  ;;  %v553_v14 = vand.u32 %v1347_v5, %v1744_v10  ;;  %v1321_v24 = vcombine.high %v240_v12, %v252_v13  ;;  %v1349_v25 = vcombine.high %v266_v17, %v278_v18  ;;  %v243_v36 = vld [vmem:[%s1728_s12 + $0x48] sm:$0xff]  ;;  %v269_v40 = vld [vmem:[%s1728_s12 + $0x118] sm:$0xff]  ;;  %v244_v55 = vld [vmem:[%s1728_s12 + $0x50] sm:$0xff] }
  0x61   : > { %674 = vmatpush1.bf16.msra.mxu0 %v520_v44  ;;  %715 = vmatpush1.bf16.msra.mxu1 %v526_v45  ;;  %v544_v22 = vand.u32 %v1344_v7, %v1744_v10  ;;  %v550_v23 = vand.u32 %v1346_v11, %v1744_v10  ;;  %v1323_v26 = vcombine.high %v241_v15, %v253_v19  ;;  %v255_v39 = vld [vmem:[%s1728_s12 + $0xa8] sm:$0xff]  ;;  %v281_v41 = vld [vmem:[%s1728_s12 + $0x178] sm:$0x33]  ;;  %v256_v56 = vld [vmem:[%s1728_s12 + $0xb0] sm:$0xff] }
  0x62   : > { %675 = vmatprep.subr.bf16.mxu0 %v1313_v46  ;;  %716 = vmatprep.subr.bf16.mxu1 %v1315_v48  ;;  %v1351_v27 = vcombine.high %v267_v20, %v279_v21  ;;  %v1320_v28 = vcombine.low %v240_v12, %v252_v13  ;;  %v1348_v29 = vcombine.low %v266_v17, %v278_v18  ;;  %v257_v58 = vld [vmem:[%s1728_s12 + $0xb8] sm:$0xff] }
  0x63   : > { %693 = vmatprep.mubr.bf16.mxu0 %v1573_v16  ;;  %734 = vmatprep.mubr.bf16.mxu1 %v1573_v16  ;;  %v1322_v30 = vcombine.low %v241_v15, %v253_v19  ;;  %v559_v31 = vand.u32 %v1349_v25, %v1744_v10  ;;  %v1350_v32 = vcombine.low %v267_v20, %v279_v21 }
  0x64   : > { %v565_v35 = vand.u32 %v1351_v27, %v1744_v10  ;;  %v556_v42 = vand.u32 %v1348_v29, %v1744_v10  ;;  %v1325_v45 = vcombine.high %v242_v33, %v254_v34  ;;  %v1353_v46 = vcombine.high %v268_v37, %v280_v38 }
  0x65   : > { %676 = vmatpush1.bf16.msra.mxu0 %v1312_v50  ;;  %717 = vmatpush1.bf16.msra.mxu1 %v1314_v52  ;;  %v562_v44 = vand.u32 %v1350_v32, %v1744_v10  ;;  %v1327_v47 = vcombine.high %v243_v36, %v255_v39  ;;  %v1355_v48 = vcombine.high %v269_v40, %v281_v41 }
  0x66   : > { %755 = vmatprep.subr.bf16.mxu0 %v535_v53  ;;  %796 = vmatprep.subr.bf16.mxu1 %v541_v57  ;;  %v1324_v49 = vcombine.low %v242_v33, %v254_v34  ;;  %v1352_v50 = vcombine.low %v268_v37, %v280_v38  ;;  %v1326_v51 = vcombine.low %v243_v36, %v255_v39  ;;  %v245_v57 = vld [vmem:[%s1728_s12 + $0x58] sm:$0xff] }
  0x67   : > { %v571_v52 = vand.u32 %v1353_v46, %v1744_v10  ;;  %v1354_v53 = vcombine.low %v269_v40, %v281_v41  ;;  %v577_v54 = vand.u32 %v1355_v48, %v1744_v10  ;;  %v1329_v61 = vcombine.high %v244_v55, %v256_v56 }
  0x68   : > { %1358 = vmatmul.mubr.msk.bf16.vlgmr.msra.gmra.mxu0 %vm499_vm3, %v1769_v43  ;;  %1359 = vmatmul.mubr.msk.bf16.vlgmr.msra.gmra.mxu1 %vm499_vm3, %v1769_v43  ;;  %v568_v59 = vand.u32 %v1352_v50, %v1744_v10  ;;  %v1331_v62 = vcombine.high %v245_v57, %v257_v58  ;;  %v1328_v63 = vcombine.low %v244_v55, %v256_v56 }
  0x69   : > { %756 = vmatpush1.bf16.msra.mxu0 %v532_v0  ;;  %797 = vmatpush1.bf16.msra.mxu1 %v538_v1  ;;  %v574_v60 = vand.u32 %v1354_v53, %v1744_v10  ;;  %v1330_v0 = vcombine.low %v245_v57, %v257_v58 }
  0x6a   : > { %757 = vmatprep.subr.bf16.mxu0 %v1317_v2  ;;  %798 = vmatprep.subr.bf16.mxu1 %v1319_v4 }
  0x6b   : > { %775 = vmatprep.mubr.bf16.mxu0 %v1573_v16  ;;  %816 = vmatprep.mubr.bf16.mxu1 %v1573_v16 }
  0x6d   : > { %758 = vmatpush1.bf16.msra.mxu0 %v1316_v6  ;;  %799 = vmatpush1.bf16.msra.mxu1 %v1318_v8 }
  0x6e   : > { %837 = vmatprep.subr.bf16.mxu0 %v547_v9  ;;  %878 = vmatprep.subr.bf16.mxu1 %v553_v14 }
  0x70   : > { %1360 = vmatmul.mubr.msk.bf16.vlgmr.msra.gmra.mxu0 %vm499_vm3, %v1769_v43  ;;  %1361 = vmatmul.mubr.msk.bf16.vlgmr.msra.gmra.mxu1 %vm499_vm3, %v1769_v43 }
  0x71   : > { %838 = vmatpush1.bf16.msra.mxu0 %v544_v22  ;;  %879 = vmatpush1.bf16.msra.mxu1 %v550_v23 }
  0x72   : > { %839 = vmatprep.subr.bf16.mxu0 %v1321_v24  ;;  %880 = vmatprep.subr.bf16.mxu1 %v1323_v26 }
  0x73   : > { %857 = vmatprep.mubr.bf16.mxu0 %v1573_v16  ;;  %898 = vmatprep.mubr.bf16.mxu1 %v1573_v16 }
  0x75   : > { %840 = vmatpush1.bf16.msra.mxu0 %v1320_v28  ;;  %881 = vmatpush1.bf16.msra.mxu1 %v1322_v30 }
  0x76   : > { %919 = vmatprep.subr.bf16.mxu0 %v559_v31  ;;  %960 = vmatprep.subr.bf16.mxu1 %v565_v35 }
  0x78   : > { %1362 = vmatmul.mubr.msk.bf16.vlgmr.msra.gmra.mxu0 %vm499_vm3, %v1769_v43  ;;  %1363 = vmatmul.mubr.msk.bf16.vlgmr.msra.gmra.mxu1 %vm499_vm3, %v1769_v43 }
  0x79   : > { %920 = vmatpush1.bf16.msra.mxu0 %v556_v42  ;;  %961 = vmatpush1.bf16.msra.mxu1 %v562_v44 }
  0x7a   : > { %921 = vmatprep.subr.bf16.mxu0 %v1325_v45  ;;  %962 = vmatprep.subr.bf16.mxu1 %v1327_v47 }
  0x7b   : > { %939 = vmatprep.mubr.bf16.mxu0 %v1573_v16  ;;  %980 = vmatprep.mubr.bf16.mxu1 %v1573_v16 }
  0x7d   : > { %922 = vmatpush1.bf16.msra.mxu0 %v1324_v49  ;;  %963 = vmatpush1.bf16.msra.mxu1 %v1326_v51 }
  0x7e   : > { %1001 = vmatprep.subr.bf16.mxu0 %v571_v52  ;;  %1042 = vmatprep.subr.bf16.mxu1 %v577_v54 }
  0x80   : > { %1364 = vmatmul.mubr.msk.bf16.vlgmr.msra.gmra.mxu0 %vm499_vm3, %v1769_v43  ;;  %1365 = vmatmul.mubr.msk.bf16.vlgmr.msra.gmra.mxu1 %vm499_vm3, %v1769_v43 }
  0x81   : > { %1002 = vmatpush1.bf16.msra.mxu0 %v568_v59  ;;  %1043 = vmatpush1.bf16.msra.mxu1 %v574_v60 }
  0x82   : > { %1003 = vmatprep.subr.bf16.mxu0 %v1329_v61  ;;  %1044 = vmatprep.subr.bf16.mxu1 %v1331_v62 }
  0x83   : > { %1021 = vmatprep.mubr.bf16.mxu0 %v1573_v16  ;;  %1062 = vmatprep.mubr.bf16.mxu1 %v1573_v16 }
  0x85   : > { %1004 = vmatpush1.bf16.msra.mxu0 %v1328_v63  ;;  %1045 = vmatpush1.bf16.msra.mxu1 %v1330_v0 }
  0x88   : > { %1366 = vmatmul.mubr.msk.bf16.vlgmr.msra.gmra.mxu0 %vm499_vm3, %v1769_v43  ;;  %1367 = vmatmul.mubr.msk.bf16.vlgmr.msra.gmra.mxu1 %vm499_vm3, %v1769_v43 }
 0x120   : > { %v613_v10 = vpop.f32.mrf.mxu0  ;;  %v654_v1 = vpop.f32.mrf.mxu1 }
 0x121   : > { %1071 = vst [vmem:[%s1735_s8] sm:$0xff] %v613_v10  ;;  %1073 = vst [vmem:[%s1735_s8 + $0x10] sm:$0xff] %v654_v1  ;;  %v1125_v3 = vmul.f32 %v613_v10, %v613_v10  ;;  %v1127_v4 = vmul.f32 %v654_v1, %v654_v1 }
 0x122   : > { %v615_v2 = vpop.f32.mrf.mxu0  ;;  %v656_v6 = vpop.f32.mrf.mxu1 }
 0x123   : > { %1072 = vst [vmem:[%s1735_s8 + $0x8] sm:$0xff] %v615_v2  ;;  %v1096_v5 = vadd.f32 %v615_v2, %v613_v10  ;;  %v1126_v16 = vmul.f32 %v615_v2, %v615_v2  ;;  %1074 = vst [vmem:[%s1735_s8 + $0x18] sm:$0xff] %v656_v6  ;;  %v1128_v13 = vmul.f32 %v656_v6, %v656_v6 }
 0x124   : > { %v617_v7 = vpop.f32.mrf.mxu0  ;;  %v658_v11 = vpop.f32.mrf.mxu1 }
 0x125   : > { %v1149_v8 = vadd.f32 %v1126_v16, %v1125_v3  ;;  %v1097_v9 = vadd.f32 %v1096_v5, %v654_v1 }
 0x126   : > { %v618_v43 = vpop.f32.mrf.mxu0  ;;  %v659_v15 = vpop.f32.mrf.mxu1 }
 0x127   : > { %v1098_v12 = vadd.f32 %v1097_v9, %v656_v6  ;;  %v1150_v14 = vadd.f32 %v1149_v8, %v1127_v4 }
 0x128   : > { %v695_v17 = vpop.f32.mrf.mxu0  ;;  %v736_v21 = vpop.f32.mrf.mxu1 }
 0x129   : > { %v1151_v18 = vadd.f32 %v1150_v14, %v1128_v13  ;;  %1075 = vst [vmem:[%s1735_s8 + $0x20] sm:$0xff] %v695_v17  ;;  %v1099_v19 = vadd.f32 %v1098_v12, %v695_v17  ;;  %v1129_v20 = vmul.f32 %v695_v17, %v695_v17  ;;  %1077 = vst [vmem:[%s1735_s8 + $0x30] sm:$0xff] %v736_v21 }
 0x12a   : > { %v697_v22 = vpop.f32.mrf.mxu0  ;;  %v1131_v24 = vmul.f32 %v736_v21, %v736_v21  ;;  %v738_v27 = vpop.f32.mrf.mxu1 }
 0x12b   : > { %v1152_v23 = vadd.f32 %v1151_v18, %v1129_v20  ;;  %1076 = vst [vmem:[%s1735_s8 + $0x28] sm:$0xff] %v697_v22  ;;  %v1100_v25 = vadd.f32 %v1099_v19, %v697_v22  ;;  %v1130_v26 = vmul.f32 %v697_v22, %v697_v22  ;;  %1078 = vst [vmem:[%s1735_s8 + $0x38] sm:$0xff] %v738_v27 }
 0x12c   : > { %v699_v28 = vpop.f32.mrf.mxu0  ;;  %v740_v31 = vpop.f32.mrf.mxu1  ;;  %v1132_v34 = vmul.f32 %v738_v27, %v738_v27 }
 0x12d   : > { %v1153_v29 = vadd.f32 %v1152_v23, %v1130_v26  ;;  %v1101_v30 = vadd.f32 %v1100_v25, %v736_v21 }
 0x12e   : > { %v700_v32 = vpop.f32.mrf.mxu0  ;;  %v741_v36 = vpop.f32.mrf.mxu1 }
 0x12f   : > { %v1102_v33 = vadd.f32 %v1101_v30, %v738_v27  ;;  %v1154_v35 = vadd.f32 %v1153_v29, %v1131_v24 }
 0x130   : > { %v777_v37 = vpop.f32.mrf.mxu0  ;;  %v818_v41 = vpop.f32.mrf.mxu1 }
 0x131   : > { %v1155_v38 = vadd.f32 %v1154_v35, %v1132_v34  ;;  %1079 = vst [vmem:[%s1735_s8 + $0x40] sm:$0xff] %v777_v37  ;;  %v1103_v39 = vadd.f32 %v1102_v33, %v777_v37  ;;  %v1133_v40 = vmul.f32 %v777_v37, %v777_v37  ;;  %1081 = vst [vmem:[%s1735_s8 + $0x50] sm:$0xff] %v818_v41 }
 0x132   : > { %v779_v42 = vpop.f32.mrf.mxu0  ;;  %v1135_v45 = vmul.f32 %v818_v41, %v818_v41  ;;  %v820_v48 = vpop.f32.mrf.mxu1 }
 0x133   : > { %v1156_v44 = vadd.f32 %v1155_v38, %v1133_v40  ;;  %1080 = vst [vmem:[%s1735_s8 + $0x48] sm:$0xff] %v779_v42  ;;  %v1104_v46 = vadd.f32 %v1103_v39, %v779_v42  ;;  %v1134_v47 = vmul.f32 %v779_v42, %v779_v42  ;;  %1082 = vst [vmem:[%s1735_s8 + $0x58] sm:$0xff] %v820_v48 }
 0x134   : > { %v781_v49 = vpop.f32.mrf.mxu0  ;;  %v822_v52 = vpop.f32.mrf.mxu1  ;;  %v1136_v55 = vmul.f32 %v820_v48, %v820_v48 }
 0x135   : > { %v1157_v50 = vadd.f32 %v1156_v44, %v1134_v47  ;;  %v1105_v51 = vadd.f32 %v1104_v46, %v818_v41 }
 0x136   : > { %v782_v53 = vpop.f32.mrf.mxu0  ;;  %v823_v57 = vpop.f32.mrf.mxu1 }
 0x137   : > { %v1106_v54 = vadd.f32 %v1105_v51, %v820_v48  ;;  %v1158_v56 = vadd.f32 %v1157_v50, %v1135_v45 }
 0x138   : > { %v859_v58 = vpop.f32.mrf.mxu0  ;;  %v900_v62 = vpop.f32.mrf.mxu1 }
 0x139   : > { %v1159_v59 = vadd.f32 %v1158_v56, %v1136_v55  ;;  %1083 = vst [vmem:[%s1735_s8 + $0x60] sm:$0xff] %v859_v58  ;;  %v1107_v60 = vadd.f32 %v1106_v54, %v859_v58  ;;  %v1137_v61 = vmul.f32 %v859_v58, %v859_v58  ;;  %1085 = vst [vmem:[%s1735_s8 + $0x70] sm:$0xff] %v900_v62  ;;  %v1095_v55 = vld [vmem:[#allocation2] sm:$0xff]  ;;  %v1124_v58 = vld [vmem:[#allocation3] sm:$0xff] }
 0x13a   : > { %v861_v63 = vpop.f32.mrf.mxu0  ;;  %v1139_v10 = vmul.f32 %v900_v62, %v900_v62  ;;  %v902_v3 = vpop.f32.mrf.mxu1 }
 0x13b   : > { %v1160_v0 = vadd.f32 %v1159_v59, %v1137_v61  ;;  %1084 = vst [vmem:[%s1735_s8 + $0x68] sm:$0xff] %v861_v63  ;;  %v1108_v1 = vadd.f32 %v1107_v60, %v861_v63  ;;  %v1138_v2 = vmul.f32 %v861_v63, %v861_v63  ;;  %1086 = vst [vmem:[%s1735_s8 + $0x78] sm:$0xff] %v902_v3 }
 0x13c   : > { %v863_v4 = vpop.f32.mrf.mxu0  ;;  %v904_v6 = vpop.f32.mrf.mxu1  ;;  %v1140_v9 = vmul.f32 %v902_v3, %v902_v3 }
 0x13d   : > { %v1161_v5 = vadd.f32 %v1160_v0, %v1138_v2  ;;  %v1109_v16 = vadd.f32 %v1108_v1, %v900_v62 }
 0x13e   : > { %v864_v7 = vpop.f32.mrf.mxu0  ;;  %v905_v43 = vpop.f32.mrf.mxu1 }
 0x13f   : > { %v1110_v8 = vadd.f32 %v1109_v16, %v902_v3  ;;  %v1162_v11 = vadd.f32 %v1161_v5, %v1139_v10 }
 0x140   : > { %v941_v12 = vpop.f32.mrf.mxu0  ;;  %v982_v17 = vpop.f32.mrf.mxu1 }
 0x141   : > { %v1163_v13 = vadd.f32 %v1162_v11, %v1140_v9  ;;  %1087 = vst [vmem:[%s1735_s8 + $0x80] sm:$0xff] %v941_v12  ;;  %v1111_v14 = vadd.f32 %v1110_v8, %v941_v12  ;;  %v1141_v15 = vmul.f32 %v941_v12, %v941_v12  ;;  %1089 = vst [vmem:[%s1735_s8 + $0x90] sm:$0xff] %v982_v17 }
 0x142   : > { %v943_v18 = vpop.f32.mrf.mxu0  ;;  %v1143_v20 = vmul.f32 %v982_v17, %v982_v17  ;;  %v984_v23 = vpop.f32.mrf.mxu1 }
 0x143   : > { %v1164_v19 = vadd.f32 %v1163_v13, %v1141_v15  ;;  %1088 = vst [vmem:[%s1735_s8 + $0x88] sm:$0xff] %v943_v18  ;;  %v1112_v21 = vadd.f32 %v1111_v14, %v943_v18  ;;  %v1142_v22 = vmul.f32 %v943_v18, %v943_v18  ;;  %1090 = vst [vmem:[%s1735_s8 + $0x98] sm:$0xff] %v984_v23 }
 0x144   : > { %v945_v24 = vpop.f32.mrf.mxu0  ;;  %v986_v27 = vpop.f32.mrf.mxu1  ;;  %v1144_v30 = vmul.f32 %v984_v23, %v984_v23 }
 0x145   : > { %v1165_v25 = vadd.f32 %v1164_v19, %v1142_v22  ;;  %v1113_v26 = vadd.f32 %v1112_v21, %v982_v17 }
 0x146   : > { %v946_v28 = vpop.f32.mrf.mxu0  ;;  %v987_v32 = vpop.f32.mrf.mxu1 }
 0x147   : > { %v1114_v29 = vadd.f32 %v1113_v26, %v984_v23  ;;  %v1166_v31 = vadd.f32 %v1165_v25, %v1143_v20 }
 0x148   : > { %v1023_v33 = vpop.f32.mrf.mxu0  ;;  %v1064_v37 = vpop.f32.mrf.mxu1 }
 0x149   : > { %v1167_v34 = vadd.f32 %v1166_v31, %v1144_v30  ;;  %1091 = vst [vmem:[%s1735_s8 + $0xa0] sm:$0xff] %v1023_v33  ;;  %v1115_v35 = vadd.f32 %v1114_v29, %v1023_v33  ;;  %v1145_v36 = vmul.f32 %v1023_v33, %v1023_v33  ;;  %1093 = vst [vmem:[%s1735_s8 + $0xb0] sm:$0xff] %v1064_v37 }
 0x14a   : > { %v1025_v38 = vpop.f32.mrf.mxu0  ;;  %v1147_v40 = vmul.f32 %v1064_v37, %v1064_v37  ;;  %v1066_v44 = vpop.f32.mrf.mxu1 }
 0x14b   : > { %v1168_v39 = vadd.f32 %v1167_v34, %v1145_v36  ;;  %1092 = vst [vmem:[%s1735_s8 + $0xa8] sm:$0xff] %v1025_v38  ;;  %v1116_v41 = vadd.f32 %v1115_v35, %v1025_v38  ;;  %v1146_v42 = vmul.f32 %v1025_v38, %v1025_v38  ;;  %1094 = vst [vmem:[%s1735_s8 + $0xb8] sm:$0xff] %v1066_v44 }
 0x14c   : > { %v1027_v45 = vpop.f32.mrf.mxu0  ;;  %v1068_v46 = vpop.f32.mrf.mxu1  ;;  %v1148_v53 = vmul.f32 %v1066_v44, %v1066_v44 }
 0x14d   : > { %v1117_v47 = vadd.f32 %v1116_v41, %v1064_v37  ;;  %v1169_v48 = vadd.f32 %v1168_v39, %v1146_v42 }
 0x14e   : > { %v1028_v49 = vpop.f32.mrf.mxu0  ;;  %v1069_v50 = vpop.f32.mrf.mxu1 }
 0x14f   : > { %v1118_v51 = vadd.f32 %v1117_v47, %v1066_v44  ;;  %v1170_v52 = vadd.f32 %v1169_v48, %v1147_v40 }
 0x151   : > { %1119 = vadd.xlane.f32.xlu0 %v1118_v51  ;;  %v1171_v54 = vadd.f32 %v1170_v52, %v1148_v53 }
 0x155   : > { %1172 = vadd.xlane.f32.xlu0 %v1171_v54 }
 0x1da   : > { %v1120_v56 = vpop.xlane.xlu0 %1119 }
 0x1db   : > { %v1121_v57 = vadd.f32 %v1120_v56, %v1095_v55 }
 0x1dd   : > { %1123 = vst.msk [vmem:[#allocation2] sm:$0xff] %vm1122_vm4, %v1121_v57  ;;  %1179 = sbr.rel (%p1368_p3) target bundleno = 512 (0x200), region = 44 }
 0x1de   : > { %v1173_v59 = vpop.xlane.xlu0 %1172 }
 0x1df   : > { %v1174_v60 = vadd.f32 %v1173_v59, %v1124_v58 }
 0x1e1   : > { %1175 = vst.msk [vmem:[#allocation3] sm:$0xff] %vm1122_vm4, %v1174_v60 }
 0x1e4   : > { %v1180_v61 = vld [vmem:[#allocation2] sm:$0xff] }
 0x1e5   : > { %v1181_v63 = vmul.f32 5.4253473e-05, %v1180_v61 }
 0x1e7   : > { %v1184_v10 = vmul.f32 %v1181_v63, %v1181_v63  ;;  %1187 = vst.msk [vmem:[%s1924_s3] sm:$0xff] %vm1122_vm4, %v1181_v63 }
 0x1e8   : > { %v1182_v62 = vld [vmem:[#allocation3] sm:$0xff] }
 0x1e9   : > { %v1183_v0 = vmul.f32 5.4253473e-05, %v1182_v62 }
 0x1eb   : > { %v1185_v1 = vsub.f32 %v1183_v0, %v1184_v10 }
 0x1ed   : > { %v1186_v2 = vmax.f32 %v1185_v1, 0.0 }
 0x1ef   : > { %v1188_v3 = vadd.f32 1e-05, %v1186_v2 }
 0x1f1   : > { %1440 = vrsqrt.f32 %v1188_v3 }
 0x1fe   : > { %v1441_v4 = vpop.eup %1440 }
 0x1ff   : > { %1190 = vst.msk [vmem:[%s1925_s4] sm:$0xff] %vm1122_vm4, %v1441_v4 }
 0x200 PF: > { %s1373_s7 = smul.u32 3072, %s1621_s19  ;;  %s1206_s13 = sshll.u32 %s1735_s8, 4  ;;  %s1207_s13 = int_to_ptr.vmem [resolvable:$true] %s1206_s13 }
 0x201   : > { %s1192_s6 = scalar_lea.sflag [#allocation6], %s1724_s9  ;;  %s1496_s5 = scalar_lea.vmem %s1207_s13, 3072 }
 0x202   : > { %s1204_s23 = scalar_lea.hbm %s1923_s2, %s1373_s7  ;;  %p1497_p7 = scmp.ne.s32.totalorder %s1207_s13, %s1496_s5 }
 0x203   : > { %p1943_p8 = scmp.ne.s32.totalorder %s1932_s27, 0  ;;  %s1574_s10 = smov [#allocation9]  }
 0x204   : > { %s1500_s11 = sshll.u32 %s1574_s10, 4  ;;  %s1501_s11 = int_to_ptr.vmem [resolvable:$false] %s1500_s11 }
 0x205   : > { %p1498_p9 = pnand %p1497_p7, %p1943_p8  ;;  %s1502_s12 = scalar_lea.vmem %s1501_s11, 6144 }
 0x206   : > { %p1503_p2 = scmp.lt.s32.totalorder %s1207_s13, %s1501_s11  ;;  %p1504_p0 = scmp.lt.s32.totalorder %s1502_s12, %s1496_s5 }
 0x207   : > { %p1499_p10 = pneg %p1498_p9 }
 0x208   : > { %p1505_p4 = por %p1504_p0, %p1503_p2 }
 0x20a   : > { %p1506_p11 = pnand %p1505_p4, %p1499_p10 }
 0x20c   : > { %1509 = shalt.err (!%p1506_p11)
}
 0x20d   : > { %s1510_s19 = scalar_lea.hbm %s1204_s23, 3072  ;;  %s1514_s8 = scalar_lea.hbm %s1923_s2, 18432 }
 0x20e   : > { %p1511_p5 = scmp.ne.s32.totalorder %s1204_s23, %s1510_s19  ;;  %p1515_p6 = scmp.lt.s32.totalorder %s1204_s23, %s1923_s2 }
 0x20f   : > { %p1516_p13 = scmp.lt.s32.totalorder %s1514_s8, %s1510_s19 }
 0x210   : > { %p1512_p12 = pnand %p1511_p5, %p1943_p8 }
 0x211   : > { %p1517_p3 = por %p1516_p13, %p1515_p6 }
 0x212   : > { %p1513_p1 = pneg %p1512_p12 }
 0x214   : > { %p1518_p7 = pnand %p1517_p3, %p1513_p1 }
 0x216   : > { %1521 = shalt.err (!%p1518_p7)
}
 0x217   : > { %1383 = dma.vmem_to_hbm [thread:$0]  (%p1943_p8), %s1207_s13, 3072, %s1204_s23, %s1192_s6  }
 0x218 PF: > { %p1400_p9 = scmp.ge.s32.totalorder %s1564_s18, 2  ;;  %s1230_s25 = sand.u32 1, %s1552_s15  }
 0x219   : > { %p1944_p10 = scmp.ne.s32.totalorder %s1933_s28, 0  ;;  %s1231_s30 = scalar_lea.sflag [#allocation6], %s1230_s25 }
 0x21b   : > { %p1394_p2 = pnand %p1400_p9, %p1944_p10 }
 0x21d   : > { %p1395_p0 = pneg %p1394_p2 }
 0x21f   : > { %1547 = dma.done.wait (%p1395_p0), %s1231_s30, 3072  }
 0x220   : > { %1549 = vsyncadd (%p1395_p0), %s1231_s30, 4294964224  ;;  %p19_p4 = scmp.ge.s32.totalorder %s1625_s21, 8   ;;  %s1945_s15 = smov %s1556_s16 }
 0x221   : > { %s1946_s16 = smov %s1560_s17  ;;  %s1947_s17 = smov %s1637_s24 }
 0x222   : > { %s1948_s18 = smov %s1625_s21  ;;  %21 = sbr.rel (!%p19_p4) target bundleno = 6 (0x6), region = 102 }
 0x227   :  { %1236 = vsyncpa [#allocation5], 1 }
 0x228   :  { %1238 = vsyncpa [#allocation5 + $0x1], 1 }
 0x229   :  { %1239 = vsyncpa [#allocation8], 1 }
 0x22a   :  { %1241 = vsyncpa [#allocation8 + $0x1], 1 }
 0x22b   :  { %1242 = vsyncpa [#allocation6], 1 }
 0x22c   :  { %1244 = vsyncpa [#allocation6 + $0x1], 1 }

</bundles_post_ra>
